<compile_context>
chip_gen: v6e
topology: v6e:2x2x1
jax: 0.10.0
libtpu: 0.0.40
codegen_flags: <defaults>
</compile_context>

<pallas_src>
import math
import functools

import jax
import jax.numpy as jnp
from jax.experimental import pallas as pl
from jax.experimental.pallas import tpu as pltpu


def _round_up(a, m):
    return (a + m - 1) // m * m


def aam_kernel(x_ref, wt_ref, label_ref, loss_ref, m_scr, l_scr, tgt_scr,
               *, cos_m, sin_m, th, mm, scale, s_actual, block_s, mask_tail):
    s = pl.program_id(1)
    n_s = pl.num_programs(1)

    @pl.when(s == 0)
    def _init():
        m_scr[...] = jnp.full(m_scr.shape, -jnp.inf, dtype=m_scr.dtype)
        l_scr[...] = jnp.zeros(l_scr.shape, dtype=l_scr.dtype)
        tgt_scr[...] = jnp.zeros(tgt_scr.shape, dtype=tgt_scr.dtype)

    # --- row L2 normalization of the batch tile (f32 math, rsqrt on the EUP) ---
    x = x_ref[...].astype(jnp.float32)                                 # (TB, D)
    sumsq = jnp.sum(x * x, axis=-1, keepdims=True)
    x_n = (x * jax.lax.rsqrt(jnp.maximum(sumsq, 1e-24))).astype(jnp.bfloat16)

    # --- cosine for this class tile on the MXU: bf16 x bf16 -> f32 acc ---------
    cosine = jnp.dot(x_n, wt_ref[...], preferred_element_type=jnp.float32)  # (TB, TS)

    tb, ts = cosine.shape
    col0 = s * block_s
    cols = col0 + jax.lax.broadcasted_iota(jnp.int32, (tb, ts), 1)      # global class id
    lbl = label_ref[...]                                                # (TB, 1) int32
    is_label = cols == lbl                                              # (TB, TS) bool
    in_tile = (lbl >= col0) & (lbl < col0 + block_s)                    # (TB, 1) bool

    # --- margin math only on the gathered label-column cosine (TB, 1) ---------
    label_cos = jnp.sum(jnp.where(is_label, cosine, 0.0), axis=-1, keepdims=True)
    sine = jnp.sqrt(jnp.clip(1.0 - label_cos * label_cos, 0.0, 1.0))
    phi = label_cos * cos_m - sine * sin_m
    phi = jnp.where(label_cos - th > 0, phi, label_cos - mm)

    # logits for this tile: label column gets phi, everything else raw cosine.
    logits = jnp.where(is_label, phi, cosine) * scale                   # (TB, TS)
    if mask_tail:
        logits = jnp.where(cols < s_actual, logits, -1e30)

    # --- online logsumexp accumulation over class tiles ------------------------
    m_prev = m_scr[...]
    m_new = jnp.maximum(m_prev, jnp.max(logits, axis=-1, keepdims=True))
    l_scr[...] = l_scr[...] * jnp.exp(m_prev - m_new) + jnp.sum(
        jnp.exp(logits - m_new), axis=-1, keepdims=True)
    m_scr[...] = m_new
    # Target logit is known in closed form once the label cosine is gathered.
    tgt_scr[...] += jnp.where(in_tile, phi * scale, 0.0)

    @pl.when(s == n_s - 1)
    def _finalize():
        # per-row CE: logsumexp(logits) - logits[label]
        loss_ref[...] = m_scr[...] + jnp.log(l_scr[...]) - tgt_scr[...]


def aam_softmax_loss(x, weight, label, *, margin=0.2, scale=30.0,
                     block_b=128, block_s=512):
    """x: (B, 192) f32, weight: (S, 192) f32, label: (B,) int32 -> scalar loss.

    block_b / block_s: batch-tile and class-tile sizes. block_s can be raised
    (e.g. 2048-8192 on v6e) or lowered for v7x's smaller VMEM; the per-step
    working set is ~ block_b*192*4 + 192*block_s*2 bytes (double-buffered).
    """
    B, D = x.shape
    S, D2 = weight.shape
    assert D == D2

    cos_m = math.cos(margin)
    sin_m = math.sin(margin)
    th = math.cos(math.pi - margin)
    mm = math.sin(math.pi - margin) * margin

    # ---- tile / padding bookkeeping -----------------------------------------
    tb = min(block_b, _round_up(B, 8))
    b_pad = _round_up(B, tb)
    ts = min(block_s, _round_up(S, 128))     # keep class tiles 128-aligned (MXU lanes)
    s_pad = _round_up(S, ts)

    # ---- one-time prep in plain JAX ------------------------------------------
    x32 = x.astype(jnp.float32)
    if b_pad != B:
        x32 = jnp.pad(x32, ((0, b_pad - B), (0, 0)))
    lbl2d = label.astype(jnp.int32).reshape(-1, 1)
    if b_pad != B:
        lbl2d = jnp.pad(lbl2d, ((0, b_pad - B), (0, 0)))

    w32 = weight.astype(jnp.float32)
    w_n = w32 * jax.lax.rsqrt(
        jnp.maximum(jnp.sum(w32 * w32, axis=-1, keepdims=True), 1e-24))
    wt = w_n.T.astype(jnp.bfloat16)          # (D, S): classes on the lane axis
    if s_pad != S:
        wt = jnp.pad(wt, ((0, 0), (0, s_pad - S)))

    kernel = functools.partial(
        aam_kernel,
        cos_m=cos_m, sin_m=sin_m, th=th, mm=mm, scale=float(scale),
        s_actual=S, block_s=ts, mask_tail=(s_pad != S),
    )

    grid = (b_pad // tb, s_pad // ts)

    per_row = pl.pallas_call(
        kernel,
        out_shape=jax.ShapeDtypeStruct((b_pad, 1), jnp.float32),
        grid_spec=pltpu.PrefetchScalarGridSpec(
            num_scalar_prefetch=0,
            grid=grid,
            in_specs=[
                pl.BlockSpec((tb, D), lambda i, s: (i, 0)),   # x rows (re-used over s)
                pl.BlockSpec((D, ts), lambda i, s: (0, s)),   # normalized weight columns
                pl.BlockSpec((tb, 1), lambda i, s: (i, 0)),   # labels (vector compare)
            ],
            out_specs=pl.BlockSpec((tb, 1), lambda i, s: (i, 0)),
            scratch_shapes=[
                pltpu.VMEM((tb, 1), jnp.float32),   # running max  m
                pltpu.VMEM((tb, 1), jnp.float32),   # running sum  l
                pltpu.VMEM((tb, 1), jnp.float32),   # scaled target logit
            ],
        ),
        compiler_params=pltpu.CompilerParams(
            dimension_semantics=("parallel", "arbitrary"),
            vmem_limit_bytes=32 * 1024 * 1024,
        ),
    )(x32, wt, lbl2d)

    # nn.CrossEntropyLoss default reduction = mean over batch (drop padded rows).
    return jnp.mean(per_row[:B, 0])


def _reference_loss(x, weight, label, *, margin=0.2, scale=30.0, bf16_matmul=False):
    """Plain-JAX reference. bf16_matmul=True mirrors the kernel's numeric path."""
    cos_m = math.cos(margin)
    sin_m = math.sin(margin)
    th = math.cos(math.pi - margin)
    mm = math.sin(math.pi - margin) * margin
    if bf16_matmul:
        x_n = (x * jax.lax.rsqrt(
            jnp.maximum(jnp.sum(x * x, -1, keepdims=True), 1e-24))
        ).astype(jnp.bfloat16).astype(jnp.float32)
        w_n = (weight * jax.lax.rsqrt(
            jnp.maximum(jnp.sum(weight * weight, -1, keepdims=True), 1e-24))
        ).astype(jnp.bfloat16).astype(jnp.float32)
    else:
        x_n = x / jnp.maximum(jnp.linalg.norm(x, axis=-1, keepdims=True), 1e-12)
        w_n = weight / jnp.maximum(jnp.linalg.norm(weight, axis=-1, keepdims=True), 1e-12)
    cosine = x_n @ w_n.T
    sine = jnp.sqrt(jnp.clip(1.0 - cosine * cosine, 0.0, 1.0))
    phi = cosine * cos_m - sine * sin_m
    phi = jnp.where(cosine - th > 0, phi, cosine - mm)
    one_hot = jax.nn.one_hot(label, weight.shape[0], dtype=jnp.float32)
    logits = (one_hot * phi + (1.0 - one_hot) * cosine) * scale
    logp = jax.nn.log_softmax(logits, axis=-1)
    return -jnp.mean(jnp.sum(one_hot * logp, axis=-1))


if __name__ == "__main__":
    key = jax.random.PRNGKey(0)
    # Small demo shapes: 2 batch tiles x 3 class tiles (last class tile padded).
    B, D, S = 32, 192, 300

    kx, kw, kl = jax.random.split(key, 3)
    x = jax.random.normal(kx, (B, D), dtype=jnp.float32)
    # xavier_normal_ with gain=1: std = sqrt(2 / (fan_in + fan_out))
    std = math.sqrt(2.0 / (S + D))
    weight = std * jax.random.normal(kw, (S, D), dtype=jnp.float32)
    label = jax.random.randint(kl, (B,), 0, S, dtype=jnp.int32)

    loss = aam_softmax_loss(x, weight, label, margin=0.2, scale=30.0,
                            block_b=16, block_s=128)
    loss = jax.block_until_ready(loss)

    # Tight check against a reference that mirrors the kernel's bf16 matmul path.
    ref_bf16 = _reference_loss(x, weight, label, margin=0.2, scale=30.0,
                               bf16_matmul=True)
    # Looser check against the exact f32 PyTorch-module semantics.
    ref_f32 = _reference_loss(x, weight, label, margin=0.2, scale=30.0,
                              bf16_matmul=False)

    assert jnp.allclose(loss, ref_bf16, rtol=1e-3, atol=1e-3), (loss, ref_bf16)
    assert jnp.allclose(loss, ref_f32, rtol=3e-2, atol=3e-2), (loss, ref_f32)

    print("KERNEL_OK")
</pallas_src>

<mosaic_0001>
module attributes {stable_mosaic.version = 11 : i64} {
  func.func @aam_kernel(%arg0: i32, %arg1: i32, %arg2: memref<16x192xf32, #tpu.memory_space<vmem>>, %arg3: memref<192x128xbf16, #tpu.memory_space<vmem>>, %arg4: memref<16x1xi32, #tpu.memory_space<vmem>>, %arg5: memref<16x1xf32, #tpu.memory_space<vmem>>, %arg6: memref<16x1xf32, #tpu.memory_space<vmem>>, %arg7: memref<16x1xf32, #tpu.memory_space<vmem>>, %arg8: memref<16x1xf32, #tpu.memory_space<vmem>>) attributes {dimension_semantics = [#tpu.dimension_semantics<parallel>, #tpu.dimension_semantics<arbitrary>], iteration_bounds = array<i64: 2, 3>, scalar_prefetch = 0 : i64, scratch_operands = 3 : i64, tpu.core_type = #tpu.core_type<tc>, window_params = [{transform_indices = @transform_0, window_bounds = array<i64: 16, 192>}, {transform_indices = @transform_1, window_bounds = array<i64: 192, 128>}, {transform_indices = @transform_2, window_bounds = array<i64: 16, 1>}, {transform_indices = @transform_3, window_bounds = array<i64: 16, 1>}]} {
    %c0_i32 = arith.constant 0 : i32
    %0 = arith.cmpi eq, %arg1, %c0_i32 : i32
    %1 = arith.extui %0 : i1 to i32
    %c0_i32_0 = arith.constant 0 : i32
    %2 = arith.cmpi ne, %1, %c0_i32_0 : i32
    scf.if %2 {
      %cst_38 = arith.constant 0xFF800000 : f32
      %87 = vector.broadcast %cst_38 : f32 to vector<16x1xf32>
      %c0_39 = arith.constant 0 : index
      %c0_40 = arith.constant 0 : index
      %88 = vector.load %arg6[%c0_39, %c0_40] : memref<16x1xf32, #tpu.memory_space<vmem>>, vector<16x1xf32>
      tpu.vector_store %arg6[%c0_39, %c0_40], %87 {strides = array<i32>} : memref<16x1xf32, #tpu.memory_space<vmem>>, vector<16x1xf32>,
      %cst_41 = arith.constant 0.000000e+00 : f32
      %89 = vector.broadcast %cst_41 : f32 to vector<16x1xf32>
      %c0_42 = arith.constant 0 : index
      %c0_43 = arith.constant 0 : index
      %90 = vector.load %arg7[%c0_42, %c0_43] : memref<16x1xf32, #tpu.memory_space<vmem>>, vector<16x1xf32>
      tpu.vector_store %arg7[%c0_42, %c0_43], %89 {strides = array<i32>} : memref<16x1xf32, #tpu.memory_space<vmem>>, vector<16x1xf32>,
      %cst_44 = arith.constant 0.000000e+00 : f32
      %91 = vector.broadcast %cst_44 : f32 to vector<16x1xf32>
      %c0_45 = arith.constant 0 : index
      %c0_46 = arith.constant 0 : index
      %92 = vector.load %arg8[%c0_45, %c0_46] : memref<16x1xf32, #tpu.memory_space<vmem>>, vector<16x1xf32>
      tpu.vector_store %arg8[%c0_45, %c0_46], %91 {strides = array<i32>} : memref<16x1xf32, #tpu.memory_space<vmem>>, vector<16x1xf32>,
    } else {
    }
    %c0 = arith.constant 0 : index
    %c0_1 = arith.constant 0 : index
    %3 = vector.load %arg2[%c0, %c0_1] : memref<16x192xf32, #tpu.memory_space<vmem>>, vector<16x192xf32>
    %4 = arith.mulf %3, %3 : vector<16x192xf32>
    %cst = arith.constant dense<0.000000e+00> : vector<16xf32>
    %5 = vector.multi_reduction <add>, %4, %cst [1] : vector<16x192xf32> to vector<16xf32>
    %6 = vector.shape_cast %5 : vector<16xf32> to vector<16x1xf32>
    %cst_2 = arith.constant 1.000000e-24 : f32
    %7 = vector.broadcast %cst_2 : f32 to vector<16x1xf32>
    %8 = arith.maximumf %6, %7 : vector<16x1xf32>
    %9 = math.rsqrt %8 : vector<16x1xf32>
    %10 = vector.broadcast %9 : vector<16x1xf32> to vector<16x192xf32>
    %11 = arith.mulf %3, %10 : vector<16x192xf32>
    %12 = arith.truncf %11 : vector<16x192xf32> to vector<16x192xbf16>
    %c0_3 = arith.constant 0 : index
    %c0_4 = arith.constant 0 : index
    %13 = vector.load %arg3[%c0_3, %c0_4] : memref<192x128xbf16, #tpu.memory_space<vmem>>, vector<192x128xbf16>
    %cst_5 = arith.constant dense<0.000000e+00> : vector<16x128xf32>
    %14 = tpu.matmul %12, %13, %cst_5 {dimension_numbers = #tpu.dot_dimension_numbers<[1], [0], [0], [1], [0, 0, 1, 1], [], []>} : vector<16x192xbf16>, vector<192x128xbf16>, vector<16x128xf32> -> vector<16x128xf32>
    %c128_i32 = arith.constant 128 : i32
    %15 = arith.muli %arg1, %c128_i32 : i32
    %16 = tpu.iota {dimensions = array<i32: 1>} : vector<16x128xi32>
    %17 = vector.broadcast %15 : i32 to vector<16x128xi32>
    %18 = arith.addi %17, %16 : vector<16x128xi32>
    %c0_6 = arith.constant 0 : index
    %c0_7 = arith.constant 0 : index
    %19 = vector.load %arg4[%c0_6, %c0_7] : memref<16x1xi32, #tpu.memory_space<vmem>>, vector<16x1xi32>
    %20 = vector.broadcast %19 : vector<16x1xi32> to vector<16x128xi32>
    %21 = arith.cmpi eq, %18, %20 : vector<16x128xi32>
    %22 = vector.broadcast %15 : i32 to vector<16x1xi32>
    %23 = arith.cmpi sge, %19, %22 : vector<16x1xi32>
    %c128_i32_8 = arith.constant 128 : i32
    %24 = arith.addi %15, %c128_i32_8 : i32
    %25 = vector.broadcast %24 : i32 to vector<16x1xi32>
    %26 = arith.cmpi slt, %19, %25 : vector<16x1xi32>
    %27 = arith.andi %23, %26 : vector<16x1xi1>
    %cst_9 = arith.constant 0.000000e+00 : f32
    %28 = vector.broadcast %cst_9 : f32 to vector<16x128xf32>
    %29 = arith.select %21, %14, %28 : vector<16x128xi1>, vector<16x128xf32>
    %cst_10 = arith.constant dense<0.000000e+00> : vector<16xf32>
    %30 = vector.multi_reduction <add>, %29, %cst_10 [1] : vector<16x128xf32> to vector<16xf32>
    %31 = vector.shape_cast %30 : vector<16xf32> to vector<16x1xf32>
    %32 = arith.mulf %31, %31 : vector<16x1xf32>
    %cst_11 = arith.constant 1.000000e+00 : f32
    %33 = vector.broadcast %cst_11 : f32 to vector<16x1xf32>
    %34 = arith.subf %33, %32 : vector<16x1xf32>
    %cst_12 = arith.constant 0.000000e+00 : f32
    %cst_13 = arith.constant 1.000000e+00 : f32
    %35 = vector.broadcast %cst_12 : f32 to vector<16x1xf32>
    %36 = arith.maximumf %35, %34 : vector<16x1xf32>
    %37 = vector.broadcast %cst_13 : f32 to vector<16x1xf32>
    %38 = arith.minimumf %37, %36 : vector<16x1xf32>
    %39 = math.sqrt %38 : vector<16x1xf32>
    %cst_14 = arith.constant 0.980066597 : f32
    %40 = vector.broadcast %cst_14 : f32 to vector<16x1xf32>
    %41 = arith.mulf %31, %40 : vector<16x1xf32>
    %cst_15 = arith.constant 0.198669329 : f32
    %42 = vector.broadcast %cst_15 : f32 to vector<16x1xf32>
    %43 = arith.mulf %39, %42 : vector<16x1xf32>
    %44 = arith.subf %41, %43 : vector<16x1xf32>
    %cst_16 = arith.constant -0.980066597 : f32
    %45 = vector.broadcast %cst_16 : f32 to vector<16x1xf32>
    %46 = arith.subf %31, %45 : vector<16x1xf32>
    %cst_17 = arith.constant 0.000000e+00 : f32
    %47 = vector.broadcast %cst_17 : f32 to vector<16x1xf32>
    %48 = arith.cmpf ogt, %46, %47 : vector<16x1xf32>
    %cst_18 = arith.constant 0.0397338644 : f32
    %49 = vector.broadcast %cst_18 : f32 to vector<16x1xf32>
    %50 = arith.subf %31, %49 : vector<16x1xf32>
    %51 = arith.select %48, %44, %50 : vector<16x1xi1>, vector<16x1xf32>
    %52 = vector.shape_cast %51 : vector<16x1xf32> to vector<16x1xf32>
    %53 = vector.broadcast %52 : vector<16x1xf32> to vector<16x128xf32>
    %54 = arith.select %21, %53, %14 : vector<16x128xi1>, vector<16x128xf32>
    %cst_19 = arith.constant 3.000000e+01 : f32
    %55 = vector.broadcast %cst_19 : f32 to vector<16x128xf32>
    %56 = arith.mulf %54, %55 : vector<16x128xf32>
    %c300_i32 = arith.constant 300 : i32
    %57 = vector.broadcast %c300_i32 : i32 to vector<16x128xi32>
    %58 = arith.cmpi slt, %18, %57 : vector<16x128xi32>
    %cst_20 = arith.constant -1.000000e+30 : f32
    %59 = vector.broadcast %cst_20 : f32 to vector<16x128xf32>
    %60 = arith.select %58, %56, %59 : vector<16x128xi1>, vector<16x128xf32>
    %c0_21 = arith.constant 0 : index
    %c0_22 = arith.constant 0 : index
    %61 = vector.load %arg6[%c0_21, %c0_22] : memref<16x1xf32, #tpu.memory_space<vmem>>, vector<16x1xf32>
    %cst_23 = arith.constant dense<0xFF800000> : vector<16xf32>
    %62 = vector.multi_reduction <maximumf>, %60, %cst_23 [1] : vector<16x128xf32> to vector<16xf32>
    %63 = vector.shape_cast %62 : vector<16xf32> to vector<16x1xf32>
    %64 = arith.maximumf %61, %63 : vector<16x1xf32>
    %c0_24 = arith.constant 0 : index
    %c0_25 = arith.constant 0 : index
    %65 = vector.load %arg7[%c0_24, %c0_25] : memref<16x1xf32, #tpu.memory_space<vmem>>, vector<16x1xf32>
    %66 = arith.subf %61, %64 : vector<16x1xf32>
    %67 = math.exp %66 : vector<16x1xf32>
    %68 = arith.mulf %65, %67 : vector<16x1xf32>
    %69 = vector.broadcast %64 : vector<16x1xf32> to vector<16x128xf32>
    %70 = arith.subf %60, %69 : vector<16x128xf32>
    %71 = math.exp %70 : vector<16x128xf32>
    %cst_26 = arith.constant dense<0.000000e+00> : vector<16xf32>
    %72 = vector.multi_reduction <add>, %71, %cst_26 [1] : vector<16x128xf32> to vector<16xf32>
    %73 = vector.shape_cast %72 : vector<16xf32> to vector<16x1xf32>
    %74 = arith.addf %68, %73 : vector<16x1xf32>
    %c0_27 = arith.constant 0 : index
    %c0_28 = arith.constant 0 : index
    %75 = vector.load %arg7[%c0_27, %c0_28] : memref<16x1xf32, #tpu.memory_space<vmem>>, vector<16x1xf32>
    tpu.vector_store %arg7[%c0_27, %c0_28], %74 {strides = array<i32>} : memref<16x1xf32, #tpu.memory_space<vmem>>, vector<16x1xf32>,
    %c0_29 = arith.constant 0 : index
    %c0_30 = arith.constant 0 : index
    %76 = vector.load %arg6[%c0_29, %c0_30] : memref<16x1xf32, #tpu.memory_space<vmem>>, vector<16x1xf32>
    tpu.vector_store %arg6[%c0_29, %c0_30], %64 {strides = array<i32>} : memref<16x1xf32, #tpu.memory_space<vmem>>, vector<16x1xf32>,
    %c0_31 = arith.constant 0 : index
    %c0_32 = arith.constant 0 : index
    %77 = vector.load %arg8[%c0_31, %c0_32] : memref<16x1xf32, #tpu.memory_space<vmem>>, vector<16x1xf32>
    %cst_33 = arith.constant 3.000000e+01 : f32
    %78 = vector.broadcast %cst_33 : f32 to vector<16x1xf32>
    %79 = arith.mulf %51, %78 : vector<16x1xf32>
    %cst_34 = arith.constant 0.000000e+00 : f32
    %80 = vector.broadcast %cst_34 : f32 to vector<16x1xf32>
    %81 = arith.select %27, %79, %80 : vector<16x1xi1>, vector<16x1xf32>
    %82 = arith.addf %77, %81 : vector<16x1xf32>
    %c0_35 = arith.constant 0 : index
    %c0_36 = arith.constant 0 : index
    %83 = vector.load %arg8[%c0_35, %c0_36] : memref<16x1xf32, #tpu.memory_space<vmem>>, vector<16x1xf32>
    tpu.vector_store %arg8[%c0_35, %c0_36], %82 {strides = array<i32>} : memref<16x1xf32, #tpu.memory_space<vmem>>, vector<16x1xf32>,
    %c2_i32 = arith.constant 2 : i32
    %84 = arith.cmpi eq, %arg1, %c2_i32 : i32
    %85 = arith.extui %84 : i1 to i32
    %c0_i32_37 = arith.constant 0 : i32
    %86 = arith.cmpi ne, %85, %c0_i32_37 : i32
    scf.if %86 {
      %c0_38 = arith.constant 0 : index
      %c0_39 = arith.constant 0 : index
      %87 = vector.load %arg6[%c0_38, %c0_39] : memref<16x1xf32, #tpu.memory_space<vmem>>, vector<16x1xf32>
      %c0_40 = arith.constant 0 : index
      %c0_41 = arith.constant 0 : index
      %88 = vector.load %arg7[%c0_40, %c0_41] : memref<16x1xf32, #tpu.memory_space<vmem>>, vector<16x1xf32>
      %89 = math.log %88 : vector<16x1xf32>
      %90 = arith.addf %87, %89 : vector<16x1xf32>
      %c0_42 = arith.constant 0 : index
      %c0_43 = arith.constant 0 : index
      %91 = vector.load %arg8[%c0_42, %c0_43] : memref<16x1xf32, #tpu.memory_space<vmem>>, vector<16x1xf32>
      %92 = arith.subf %90, %91 : vector<16x1xf32>
      %c0_44 = arith.constant 0 : index
      %c0_45 = arith.constant 0 : index
      %93 = vector.load %arg5[%c0_44, %c0_45] : memref<16x1xf32, #tpu.memory_space<vmem>>, vector<16x1xf32>
      tpu.vector_store %arg5[%c0_44, %c0_45], %92 {strides = array<i32>} : memref<16x1xf32, #tpu.memory_space<vmem>>, vector<16x1xf32>,
    } else {
    }
    return
  }
  func.func @transform_0(%arg0: i32, %arg1: i32) -> (i32, i32) {
    %c0_i32 = arith.constant 0 : i32
    %c0_i32_0 = arith.constant 0 : i32
    return %arg0, %c0_i32 : i32, i32
  }
  func.func @transform_1(%arg0: i32, %arg1: i32) -> (i32, i32) {
    %c0_i32 = arith.constant 0 : i32
    %c0_i32_0 = arith.constant 0 : i32
    return %c0_i32, %arg1 : i32, i32
  }
  func.func @transform_2(%arg0: i32, %arg1: i32) -> (i32, i32) {
    %c0_i32 = arith.constant 0 : i32
    %c0_i32_0 = arith.constant 0 : i32
    return %arg0, %c0_i32 : i32, i32
  }
  func.func @transform_3(%arg0: i32, %arg1: i32) -> (i32, i32) {
    %c0_i32 = arith.constant 0 : i32
    %c0_i32_0 = arith.constant 0 : i32
    return %arg0, %c0_i32 : i32, i32
  }
}

</mosaic_0001>

<bundles_post_ra>
// kernel: tpu_custom_call.1
= control target key start
LH: loop header
LB: loop body
LE: loop exit
PB: predicated region body
PF: predicated region fallthrough
CT: control target
= control target key end

     0   :  { %s1365_s0 = inlined_call_operand.hbm [shape: f32[32,192], index: 0, kind: input, shape index: {}]   ;;  %s1366_s1 = inlined_call_operand.hbm [shape: bf16[192,384], index: 1, kind: input, shape index: {}]   ;;  %s1367_s2 = inlined_call_operand.vmem [shape: s32[32,1], index: 2, kind: input, shape index: {}]   ;;  %s1368_s3 = inlined_call_operand.vmem [shape: f32[32,1], index: 3, kind: output, shape index: {}]  }
   0x1   :  { %1370 = sst [smem:[#allocation12_spill]] %s1365_s0 }
   0x2   :  { %1371 = sst [smem:[#allocation13_spill]] %s1366_s1 }
   0x3   :  { %8 = vsyncpa [#allocation6], 0 }
   0x4   :  { %10 = vsyncpa [#allocation6 + $0x1], 0 }
   0x5   :  { %11 = vsyncpa [#allocation8], 0 }
   0x6   :  { %13 = vsyncpa [#allocation8 + $0x1], 0  ;;  %s1072_s12 = smov 0   ;;  %s1074_s13 = smov 0  }
   0x7   :  { %s1076_s14 = smov 0   ;;  %s1078_s15 = smov 0  }
   0x8   :  { %s1080_s16 = smov 0   ;;  %s1082_s17 = smov 0  }
   0x9   :  { %s1084_s18 = smov 0   ;;  %s1086_s19 = smov 0  }
   0xa   :  { %s1088_s20 = smov 0   ;;  %s1090_s21 = smov 0  }
   0xb   :  { %s1092_s22 = smov 0  }
   0xc LB: > { %s707_s23 = sadd.s32 4294967295, %s1040_s22   ;;  %s31_s24 = sadd.s32 1, %s1036_s21  ;;  %s1040_s22 = sphi %s1092_s22, %s19_s22   ;;  %s1036_s21 = sphi %s1090_s21, %s1396_s21   ;;  %s1032_s20 = sphi %s1088_s20, %s1395_s20   ;;  %s1028_s19 = sphi %s1086_s19, %s1394_s19   ;;  %s1024_s18 = sphi %s1084_s18, %s1393_s18   ;;  %s1020_s17 = sphi %s1082_s17, %s1392_s17   ;;  %s1016_s16 = sphi %s1080_s16, %s1391_s16   ;;  %s1012_s15 = sphi %s1078_s15, %s1390_s15   ;;  %s1008_s14 = sphi %s1076_s14, %s1389_s14   ;;  %s1004_s13 = sphi %s1074_s13, %s1388_s13   ;;  %s1000_s12 = sphi %s1072_s12, %s1387_s12  }
   0xd   : > { %s38_s25 = sadd.s32 1, %s1020_s17  ;;  %p45_p0 = scmp.ne.s32.totalorder %s1020_s17, %s1016_s16 }
   0xe   : > { %p46_p1 = scmp.eq.s32.totalorder %s1040_s22, 0  ;;  %p51_p2 = scmp.ne.s32.totalorder %s1016_s16, %s1012_s15 }
   0xf   : > { %p1132_p3 = scmp.eq.s32.totalorder %s707_s23, 0  ;;  %p759_p5 = scmp.lt.s32.totalorder %s1040_s22, 6 }
  0x10   : > { %p47_p4 = por %p46_p1, %p45_p0  ;;  %s153_s28 = sand.u32 1, %s1020_s17  }
  0x11   : > { %p1141_p6 = por %p1132_p3, %p51_p2  ;;  %s711_s29 = sshll.u32 %s153_s28, 5 }
  0x12   : > { %s745_s30 = sshll.u32 %s1036_s21, 9  ;;  %s1374_s0 = sld [smem:[#allocation12_spill]] }
  0x13   : > { %s157_s7 = scalar_lea.vmem [#allocation5], %s711_s29  ;;  %p1152_p7 = pnand %p759_p5, %p47_p4 }
  0x14   : > { %s165_s8 = sshll.u32 %s157_s7, 4  ;;  %p716_p8 = scmp.ge.s32.totalorder %s1040_s22, 1  ;;  %s166_s8 = int_to_ptr.vmem [resolvable:$true] %s165_s8 }
  0x15   : > { %s154_s10 = scalar_lea.sflag [#allocation6], %s153_s28  ;;  %p892_p9 = pneg %p1152_p7 }
  0x16   : > { %s903_s11 = scalar_lea.vmem %s166_s8, 512  ;;  %s1042_s15 = smov [#allocation5]  }
  0x17   : > { %p904_p10 = scmp.ne.s32.totalorder %s166_s8, %s903_s11  ;;  %s908_s23 = sshll.u32 %s1042_s15, 4  ;;  %s909_s23 = int_to_ptr.vmem [resolvable:$false] %s908_s23 }
  0x18   : > { %s164_s6 = scalar_lea.hbm %s1374_s0, %s745_s30  ;;  %s910_s29 = scalar_lea.vmem %s909_s23, 1024 }
  0x19   : > { %p906_p11 = pnand %p904_p10, %p892_p9  ;;  %p911_p13 = scmp.lt.s32.totalorder %s166_s8, %s909_s23 }
  0x1a   : > { %p912_p0 = scmp.lt.s32.totalorder %s910_s29, %s903_s11 }
  0x1b   : > { %p907_p12 = pneg %p906_p11 }
  0x1c   : > { %p913_p2 = por %p912_p0, %p911_p13 }
  0x1e   : > { %p914_p4 = pnand %p913_p2, %p907_p12 }
  0x20   : > { %917 = shalt.err (!%p914_p4)
}
  0x21   : > { %s1043_s30 = smov 256   ;;  %s1044_s28 = smov 16  }
  0x22   : > { %755 = dma.hbm_to_vmem [thread:$0]  (!%p1152_p7), %s164_s6, 512, %s166_s8, %s154_s10, %s1043_s30, %s1043_s30, %s1044_s28  }
  0x23   : > { %p202_p9 = scmp.lt.s32.totalorder %s1040_s22, 7  ;;  %s28_s5 = sadd.s32 1, %s1032_s20 }
  0x24   : > { %s64_s7 = sadd.s32 1, %s1008_s14  ;;  %p29_p11 = scmp.ge.s32.totalorder %s28_s5, 3 }
  0x25   : > { %p1164_p10 = pnand %p716_p8, %p202_p9  ;;  %p71_p12 = scmp.ne.s32.totalorder %s1008_s14, %s1004_s13 }
  0x26   : > { %p77_p13 = scmp.ne.s32.totalorder %s1004_s13, %s1000_s12  ;;  %s175_s11 = sand.u32 1, %s1008_s14  }
  0x27   : > { %s1398_s5 = smov (%p29_p11, %s28_s5), 0  ;;  %s1400_s24 = smov (!%p29_p11, %s31_s24), %s1036_s21 }
  0x28   : > { %1377 = sst [smem:[#allocation11_spill]] %s1398_s5  ;;  %s61_s6 = ssub.s32 %s1032_s20, %s1398_s5 }
  0x29   : > { %p1184_p7 = por %p71_p12, %p46_p1  ;;  %p33_p8 = scmp.ge.s32.totalorder %s1400_s24, 2 }
  0x2a   : > { %p62_p0 = scmp.eq.s32.totalorder %s61_s6, 0  ;;  %p1190_p2 = por %p77_p13, %p1132_p3 }
  0x2b   : > { %s1402_s24 = smov (%p33_p8, %s1400_s24), 0  ;;  %s746_s15 = smul.u32 96, %s175_s11 }
  0x2c   : > { %s1197_s9 = scalar_select %p62_p0, %s1008_s14, %s64_s7  }
  0x2d   : > { %s35_s10 = ssub.s32 %s1036_s21, %s1402_s24  ;;  %s715_s23 = sshll.u32 %s1032_s20, 6 }
  0x2e   : > { %p36_p4 = scmp.eq.s32.totalorder %s35_s10, 0  ;;  %s1380_s1 = sld [smem:[#allocation13_spill]] }
  0x2f   : > { %s179_s26 = scalar_lea.vmem [#allocation7], %s746_s15  ;;  %p1214_p1 = pnand %p759_p5, %p1184_p7 }
  0x30   : > { %s1208_s6 = scalar_select %p36_p4, %s1020_s17, %s38_s25  }
  0x31   : > { %s185_s0 = sshll.u32 %s179_s26, 4  ;;  %s176_s7 = scalar_lea.sflag [#allocation8], %s175_s11  ;;  %s186_s0 = int_to_ptr.vmem [resolvable:$true] %s185_s0 }
  0x32   : > { %p920_p3 = pneg %p1214_p1  ;;  %s931_s10 = scalar_lea.vmem %s186_s0, 1536 }
  0x33   : > { %p932_p9 = scmp.ne.s32.totalorder %s186_s0, %s931_s10 }
  0x34   : > { %s184_s28 = scalar_lea.hbm %s1380_s1, %s715_s23  ;;  %s1045_s23 = smov [#allocation7]  }
  0x35   : > { %p934_p11 = pnand %p932_p9, %p920_p3  ;;  %s936_s25 = sshll.u32 %s1045_s23, 4  ;;  %s937_s25 = int_to_ptr.vmem [resolvable:$false] %s936_s25 }
  0x36   : > { %s938_s15 = scalar_lea.vmem %s937_s25, 3072  ;;  %p939_p13 = scmp.lt.s32.totalorder %s186_s0, %s937_s25 }
  0x37   : > { %p935_p12 = pneg %p934_p11  ;;  %p940_p8 = scmp.lt.s32.totalorder %s938_s15, %s931_s10 }
  0x39   : > { %p941_p0 = por %p940_p8, %p939_p13 }
  0x3b   : > { %p942_p5 = pnand %p941_p0, %p935_p12 }
  0x3d   : > { %945 = shalt.err (!%p942_p5)
}
  0x3e   : > { %s1046_s8 = smov 192   ;;  %s1047_s29 = smov 64  }
  0x3f   : > { %s1048_s30 = smov 4   ;;  %206 = sbr.rel (%p1164_p10) target bundleno = 1076 (0x434), region = 32 }
  0x40   : > { %758 = dma.hbm_to_vmem [thread:$0]  (!%p1214_p1), %s184_s28, 1536, %s186_s0, %s176_s7, %s1046_s8, %s1047_s29, %s1048_s30  }
  0x41   : > { %s208_s11 = sand.u32 (!%p1164_p10), 1, %s1016_s16  }
  0x42   : > { %s717_s26 = sshll.u32 (!%p1164_p10), %s208_s11, 5  ;;  %s209_s23 = scalar_lea.sflag (!%p1164_p10), [#allocation6], %s208_s11 }
  0x43   : > { %s1225_s1 = scalar_lea.vmem (!%p1164_p10), [#allocation5], %s717_s26 }
  0x44   : > { %991 = dma.done.wait (%p1141_p6), %s209_s23, 512  }
  0x45   : > { %993 = vsyncadd (%p1141_p6), %s209_s23, 4294966784  ;;  %s217_s10 = sand.u32 1, %s1004_s13  }
  0x46   : > { %s747_s5 = smul.u32 96, %s217_s10  ;;  %s218_s0 = scalar_lea.sflag [#allocation8], %s217_s10 }
  0x48   : > { %s1232_s28 = scalar_lea.vmem [#allocation7], %s747_s5 }
  0x49   : > { %995 = dma.done.wait (%p1190_p2), %s218_s0, 1536  }
  0x4a   : > { %997 = vsyncadd (%p1190_p2), %s218_s0, 4294965760  ;;  %s718_s4 = sshll.u32 %s1028_s19, 1  ;;  %p722_p6 = scmp.ne.s32.totalorder %s1024_s18, 0 }
  0x4b   : > { %p256_p10 = scmp.lt.s32.totalorder %s718_s4, 3 }
  0x4c   : > { %271 = sbr.rel (%p722_p6) target bundleno = 85 (0x55), region = 44 }
  0x4d   : > { %s1404_s4 = smov (!%p256_p10, %s718_s4), 3 }
  0x4e   : > { %s719_s7 = sshll.u32 %s1404_s4, 3 }
  0x4f   : > { %s1242_s15 = scalar_lea.vmem %s1367_s2, %s719_s7  ;;  %s1247_s30 = scalar_lea.vmem %s1368_s3, %s719_s7 }
  0x51   : > { %vm272_vm0 = vcmask 7168   ;;  %v1049_v0 = vmov -inf   ;;  %v1050_v1 = vmov 0.0  }
  0x52   : > { %273 = vst.msk [vmem:[#allocation2] sm:$0xff] %vm272_vm0, %v1049_v0  ;;  %274 = vst.msk [vmem:[#allocation2 + $0x8] sm:$0xff] %vm272_vm0, %v1049_v0 }
  0x53   : > { %275 = vst.msk [vmem:[#allocation3] sm:$0xff] %vm272_vm0, %v1050_v1  ;;  %276 = vst.msk [vmem:[#allocation3 + $0x8] sm:$0xff] %vm272_vm0, %v1050_v1 }
  0x54   : > { %277 = vst.msk [vmem:[#allocation4] sm:$0xff] %vm272_vm0, %v1050_v1  ;;  %278 = vst.msk [vmem:[#allocation4 + $0x8] sm:$0xff] %vm272_vm0, %v1050_v1 }
  0x55 PF: > { %v1251_v2 = vld [vmem:[%s1225_s1] sm:$0xff]  ;;  %v1254_v3 = vld [vmem:[%s1225_s1 + $0x8] sm:$0xff]  ;;  %vm287_vm1 = vcmask 523264   ;;  %v1257_v4 = vld [vmem:[%s1225_s1 + $0x10] sm:$0xff]  ;;  %v1051_v8 = vmov 0   ;;  %v447_v45 = vlaneseq  ;;  %vm558_vm0 = vcmask 7168  }
  0x56   : > { %v283_v5 = vmul.f32 %v1251_v2, %v1251_v2  ;;  %v284_v6 = vmul.f32 %v1254_v3, %v1254_v3  ;;  %v1264_v7 = vld [vmem:[%s1225_s1 + $0x18] sm:$0xff]  ;;  %405 = vmatprep.subr.bf16.mxu0 %v1051_v8  ;;  %856 = vset.pattern.permute.xlu1 %v1051_v8  ;;  %v285_v9 = vmul.f32 %v1257_v4, %v1257_v4  ;;  %v859_v15 = vld [vmem:[%s1232_s28 + $0x30] sm:$0xff]   ;;  %v860_v17 = vld [vmem:[%s1232_s28 + $0x28] sm:$0xff]   ;;  %s736_s1 = sshll.u32 %s1024_s18, 7  ;;  %p741_p7 = scmp.ne.s32.totalorder %s1024_s18, 2 }
  0x57   : > { %v286_v10 = vmul.f32 %v1264_v7, %v1264_v7  ;;  %v858_v11 = vld [vmem:[%s1232_s28 + $0x38] sm:$0xff]   ;;  %857 = vset.pattern.permute.xlu0 %v1051_v8  ;;  %v861_v18 = vld [vmem:[%s1232_s28 + $0x20] sm:$0xff]   ;;  %v863_v20 = vld [vmem:[%s1232_s28 + $0x10] sm:$0xff]   ;;  %v449_v27 = vstv %s736_s1  ;;  %s463_s19 = sadd.s32 128, %s736_s1  ;;  %v448_v46 = vand.u32 127, %v447_v45 }
  0x58   : > { %v288_v12 = vsel %vm287_vm1, %v284_v6, 0.0  ;;  %406 = vmatpush1.bf16.msra.mxu0 %v858_v11  ;;  %v862_v19 = vld [vmem:[%s1232_s28 + $0x18] sm:$0xff]   ;;  %v864_v21 = vld [vmem:[%s1232_s28 + $0x8] sm:$0xff]   ;;  %v865_v22 = vld [vmem:[%s1232_s28] sm:$0xff]   ;;  %v464_v29 = vstv %s463_s19 }
  0x59   : > { %v289_v13 = vadd.f32 %v288_v12, %v283_v5  ;;  %v292_v14 = vsel %vm287_vm1, %v286_v10, 0.0  ;;  %407 = vmatprep.subr.bf16.mxu0 %v1051_v8  ;;  %v866_v23 = vld [vmem:[%s1232_s28 + $0x58] sm:$0xff]   ;;  %v867_v24 = vld [vmem:[%s1232_s28 + $0x50] sm:$0xff]   ;;  %v868_v25 = vld [vmem:[%s1232_s28 + $0x48] sm:$0xff]   ;;  %v1300_v47 = vadd.s32 %v449_v27, %v448_v46 }
  0x5a   : > { %v293_v16 = vadd.f32 %v292_v14, %v285_v9  ;;  %v451_v26 = vld [vmem:[%s1242_s15] sm:$0xff]  ;;  %v452_v28 = vld [vmem:[%s1242_s15 + $0x8] sm:$0xff]  ;;  %v869_v30 = vld [vmem:[%s1232_s28 + $0x40] sm:$0xff]  }
  0x5b   : > { %290 = vadd.xlane.f32.xlu0 %v289_v13  ;;  %454 = vperm.xlu1 %856, %v451_v26   ;;  %vm461_vm2 = vcmp.ge.s32.totalorder %v451_v26, %v449_v27  ;;  %vm462_vm3 = vcmp.ge.s32.totalorder %v452_v28, %v449_v27  ;;  %vm465_vm4 = vcmp.lt.s32.totalorder %v451_v26, %v464_v29  ;;  %vm515_vm15 = vcmp.lt.s32.totalorder %v1300_v47, 300 }
  0x5c   : > { %408 = vmatpush1.bf16.msra.mxu0 %v859_v15  ;;  %vm466_vm5 = vcmp.lt.s32.totalorder %v452_v28, %v464_v29  ;;  %vm1287_vm6 = vmand %vm461_vm2, %vm465_vm4 }
  0x5d   : > { %409 = vmatprep.subr.bf16.mxu0 %v1051_v8  ;;  %vm1291_vm7 = vmand %vm462_vm3, %vm466_vm5 }
  0x5f   : > { %294 = vadd.xlane.f32.xlu0 %v293_v16  ;;  %457 = vperm.xlu1 %856, %v452_v28  }
  0x60   : > { %410 = vmatpush1.bf16.msra.mxu0 %v860_v17 }
  0x61   : > { %411 = vmatprep.subr.bf16.mxu0 %v1051_v8 }
  0x64   : > { %412 = vmatpush1.bf16.msra.mxu0 %v861_v18 }
  0x65   : > { %413 = vmatprep.subr.bf16.mxu0 %v1051_v8 }
  0x68   : > { %414 = vmatpush1.bf16.msra.mxu0 %v862_v19 }
  0x69   : > { %415 = vmatprep.subr.bf16.mxu0 %v1051_v8 }
  0x6c   : > { %416 = vmatpush1.bf16.msra.mxu0 %v863_v20 }
  0x6d   : > { %417 = vmatprep.subr.bf16.mxu0 %v1051_v8 }
  0x70   : > { %418 = vmatpush1.bf16.msra.mxu0 %v864_v21 }
  0x71   : > { %419 = vmatprep.subr.bf16.mxu0 %v1051_v8 }
  0x74   : > { %420 = vmatpush1.bf16.msra.mxu0 %v865_v22  ;;  %v563_v22 = vld [vmem:[#allocation4] sm:$0xff] }
  0x75   : > { %429 = vmatprep.subr.bf16.mxu0 %v1051_v8 }
  0x78   : > { %430 = vmatpush2.bf16.msra.mxu0 %v866_v23 }
  0x79   : > { %431 = vmatprep.subr.bf16.mxu0 %v1051_v8 }
  0x7c   : > { %432 = vmatpush2.bf16.msra.mxu0 %v867_v24 }
  0x7d   : > { %433 = vmatprep.subr.bf16.mxu0 %v1051_v8 }
  0x80   : > { %434 = vmatpush2.bf16.msra.mxu0 %v868_v25 }
  0x81   : > { %435 = vmatprep.subr.bf16.mxu0 %v1051_v8 }
  0x84   : > { %436 = vmatpush2.bf16.msra.mxu0 %v869_v30 }
  0xd6   : > { %v455_v48 = vpop.permute.xlu1 %454 }
  0xd7   : > { %vm459_vm8 = vcmp.eq.s32.totalorder %v1300_v47, %v455_v48 }
  0xda   : > { %v458_v50 = vpop.permute.xlu1 %457 }
  0xdb   : > { %vm460_vm9 = vcmp.eq.s32.totalorder %v1300_v47, %v458_v50 }
  0xe4   : > { %v291_v33 = vpop.xlane.xlu0 %290 }
  0xe5   : > { %v296_v34 = vmax.f32 %v291_v33, 1e-24 }
  0xe7   : > { %870 = vrsqrt.f32 %v296_v34  ;;  %v564_v34 = vld [vmem:[#allocation4 + $0x8] sm:$0xff] }
  0xe8   : > { %v295_v35 = vpop.xlane.xlu0 %294 }
  0xe9   : > { %v297_v36 = vmax.f32 %v295_v35, 1e-24 }
  0xeb   : > { %872 = vrsqrt.f32 %v297_v36 }
  0xf4   : > { %v871_v37 = vpop.eup %870 }
  0xf5   : > { %v301_v39 = vmul.f32 %v871_v37, %v1254_v3  ;;  %v300_v41 = vmul.f32 %v871_v37, %v1251_v2 }
  0xf8   : > { %v873_v38 = vpop.eup %872 }
  0xf9   : > { %v303_v40 = vmul.f32 %v873_v38, %v1264_v7  ;;  %v302_v42 = vmul.f32 %v873_v38, %v1257_v4 }
  0xfb   : > { %v305_v43 = vpack.c.bf16 %v303_v40, %v301_v39  ;;  %v304_v44 = vpack.c.bf16 %v302_v42, %v300_v41  ;;  %v518_v39 = vld [vmem:[#allocation2] sm:$0xff] }
  0xfd   : > { %735 = vmatprep.mubr.msk.bf16.mxu0 %vm287_vm1, %v305_v43  ;;  %v519_v43 = vld [vmem:[#allocation2 + $0x8] sm:$0xff] }
  0xfe   : > { %438 = vmatmul.mubr.bf16.vlgmr.msra.gmra.mxu0 %v304_v44 }
 0x1be   : > { %v439_v49 = vpop.f32.mrf.mxu0 }
 0x1bf   : > { %v469_v51 = vsel %vm459_vm8, %v439_v49, 0.0 }
 0x1c0   : > { %471 = vadd.xlane.f32.xlu0 %v469_v51  ;;  %v441_v52 = vpop.f32.mrf.mxu0 }
 0x1c2   : > { %v442_v53 = vpop.f32.mrf.mxu0 }
 0x1c3   : > { %v470_v54 = vsel %vm460_vm9, %v442_v53, 0.0 }
 0x1c4   : > { %473 = vadd.xlane.f32.xlu1 %v470_v54  ;;  %v444_v55 = vpop.f32.mrf.mxu0 }
 0x249   : > { %v472_v56 = vpop.xlane.xlu0 %471 }
 0x24a   : > { %v475_v57 = vmul.f32 %v472_v56, %v472_v56  ;;  %v737_v7 = vadd.f32 0.9800666, %v472_v56  ;;  %v497_v9 = vmul.f32 0.9800666, %v472_v56  ;;  %v739_v13 = vadd.f32 -0.039733864, %v472_v56 }
 0x24c   : > { %v477_v58 = vsub.f32 1.0, %v475_v57  ;;  %vm505_vm13 = vcmp.gt.f32.partialorder %v737_v7, 0.0  ;;  %v526_v57 = vld [vmem:[#allocation3] sm:$0xff] }
 0x24d   : > { %v474_v59 = vpop.xlane.xlu1 %473 }
 0x24e   : > { %v479_v60 = vmax.f32 %v477_v58, 0.0  ;;  %v476_v61 = vmul.f32 %v474_v59, %v474_v59  ;;  %v738_v17 = vadd.f32 0.9800666, %v474_v59  ;;  %v498_v19 = vmul.f32 0.9800666, %v474_v59 }
 0x24f   : > { %v740_v26 = vadd.f32 -0.039733864, %v474_v59 }
 0x250   : > { %v481_v62 = vmin.f32 %v479_v60, 1.0  ;;  %v478_v63 = vsub.f32 1.0, %v476_v61  ;;  %vm506_vm1 = vcmp.gt.f32.partialorder %v738_v17, 0.0 }
 0x252   : > { %874 = vrsqrt.f32 %v481_v62  ;;  %v480_v0 = vmax.f32 %v478_v63, 0.0  ;;  %vm485_vm10 = vcmp.eq.f32.partialorder %v481_v62, inf  ;;  %v488_v4 = vand.u32 2147483648, %v481_v62 }
 0x253   : > { %vm487_vm11 = vcmp.eq.f32.partialorder %v481_v62, 0.0 }
 0x254   : > { %v482_v1 = vmin.f32 %v480_v0, 1.0 }
 0x256   : > { %876 = vrsqrt.f32 %v482_v1  ;;  %vm492_vm12 = vcmp.eq.f32.partialorder %v482_v1, inf  ;;  %v495_v14 = vand.u32 2147483648, %v482_v1  ;;  %vm494_vm14 = vcmp.eq.f32.partialorder %v482_v1, 0.0 }
 0x25f   : > { %v875_v2 = vpop.eup %874 }
 0x260   : > { %v484_v3 = vmul.f32 %v875_v2, %v481_v62 }
 0x262   : > { %v486_v5 = vsel %vm485_vm10, %v481_v62, %v484_v3  ;;  %v527_v62 = vld [vmem:[#allocation3 + $0x8] sm:$0xff] }
 0x263   : > { %v489_v6 = vsel %vm487_vm11, %v488_v4, %v486_v5  ;;  %v877_v8 = vpop.eup %876 }
 0x264   : > { %v499_v10 = vmul.f32 0.19866933, %v489_v6  ;;  %v491_v11 = vmul.f32 %v877_v8, %v482_v1 }
 0x266   : > { %v501_v12 = vsub.f32 %v497_v9, %v499_v10  ;;  %v493_v15 = vsel %vm492_vm12, %v482_v1, %v491_v11 }
 0x267   : > { %v496_v16 = vsel %vm494_vm14, %v495_v14, %v493_v15 }
 0x268   : > { %v509_v18 = vsel %vm505_vm13, %v501_v12, %v739_v13  ;;  %v500_v20 = vmul.f32 0.19866933, %v496_v16 }
 0x269   : > { %v511_v21 = vsel %vm459_vm8, %v509_v18, %v439_v49  ;;  %v565_v23 = vmul.f32 30.0, %v509_v18 }
 0x26a   : > { %v513_v24 = vmul.f32 30.0, %v511_v21  ;;  %v502_v25 = vsub.f32 %v498_v19, %v500_v20 }
 0x26b   : > { %v567_v27 = vsel %vm1287_vm6, %v565_v23, 0.0 }
 0x26c   : > { %v516_v28 = vsel %vm515_vm15, %v513_v24, -1e+30  ;;  %v569_v29 = vadd.f32 %v567_v27, %v563_v22  ;;  %v510_v30 = vsel %vm506_vm1, %v502_v25, %v740_v26 }
 0x26d   : > { %520 = vmax.xlane.f32.xlu0 %v516_v28  ;;  %v512_v33 = vsel %vm460_vm9, %v510_v30, %v442_v53  ;;  %v566_v35 = vmul.f32 30.0, %v510_v30 }
 0x26e   : > { %571 = vst.msk [vmem:[#allocation4] sm:$0xff] %vm558_vm0, %v569_v29  ;;  %v514_v36 = vmul.f32 30.0, %v512_v33 }
 0x26f   : > { %v568_v37 = vsel %vm1291_vm7, %v566_v35, 0.0 }
 0x270   : > { %v517_v31 = vsel %vm515_vm15, %v514_v36, -1e+30  ;;  %v570_v38 = vadd.f32 %v568_v37, %v564_v34 }
 0x271   : > { %522 = vmax.xlane.f32.xlu0 %v517_v31 }
 0x272   : > { %572 = vst.msk [vmem:[#allocation4 + $0x8] sm:$0xff] %vm558_vm0, %v570_v38 }
 0x2f6   : > { %v521_v40 = vpop.xlane.xlu0 %520 }
 0x2f7   : > { %v524_v41 = vmax.f32 %v518_v39, %v521_v40 }
 0x2f9   : > { %v528_v42 = vsub.f32 %v518_v39, %v524_v41  ;;  %561 = vst.msk [vmem:[#allocation2] sm:$0xff] %vm558_vm0, %v524_v41  ;;  %538 = vperm.xlu0 %857, %v524_v41  }
 0x2fa   : > { %v523_v44 = vpop.xlane.xlu0 %522 }
 0x2fb   : > { %v525_v45 = vmax.f32 %v519_v43, %v523_v44  ;;  %v530_v54 = vmul.f32 1.442695, %v528_v42 }
 0x2fd   : > { %v529_v46 = vsub.f32 %v519_v43, %v525_v45  ;;  %562 = vst.msk [vmem:[#allocation2 + $0x8] sm:$0xff] %vm558_vm0, %v525_v45  ;;  %543 = vperm.xlu1 %856, %v525_v45  }
 0x2ff   : > { %v532_v55 = vmul.f32 1.442695, %v529_v46 }
 0x374   : > { %v539_v32 = vpop.permute.xlu0 %538 }
 0x375   : > { %v546_v47 = vsub.f32 %v516_v28, %v539_v32 }
 0x377   : > { %v548_v48 = vmul.f32 1.442695, %v546_v47 }
 0x378   : > { %v544_v49 = vpop.permute.xlu1 %543 }
 0x379   : > { %878 = vpow2.f32 %v548_v48  ;;  %v547_v50 = vsub.f32 %v517_v31, %v544_v49 }
 0x37b   : > { %v550_v51 = vmul.f32 1.442695, %v547_v50 }
 0x37d   : > { %880 = vpow2.f32 %v550_v51 }
 0x37e   : > { %882 = vpow2.f32 %v530_v54 }
 0x37f   : > { %884 = vpow2.f32 %v532_v55 }
 0x386   : > { %v879_v52 = vpop.eup %878 }
 0x387   : > { %552 = vadd.xlane.f32.xlu1 %v879_v52 }
 0x38a   : > { %v881_v53 = vpop.eup %880 }
 0x38b   : > { %554 = vadd.xlane.f32.xlu0 %v881_v53  ;;  %v883_v56 = vpop.eup %882 }
 0x38c   : > { %v534_v58 = vmul.f32 %v883_v56, %v526_v57  ;;  %v885_v60 = vpop.eup %884 }
 0x38d   : > { %v535_v63 = vmul.f32 %v885_v60, %v527_v62 }
 0x410   : > { %v553_v59 = vpop.xlane.xlu1 %552 }
 0x411   : > { %v556_v61 = vadd.f32 %v553_v59, %v534_v58 }
 0x413   : > { %559 = vst.msk [vmem:[#allocation3] sm:$0xff] %vm558_vm0, %v556_v61  ;;  %576 = sbr.rel (%p741_p7) target bundleno = 1076 (0x434), region = 48 }
 0x414   : > { %v555_v0 = vpop.xlane.xlu0 %554 }
 0x415   : > { %v557_v1 = vadd.f32 %v555_v0, %v535_v63 }
 0x417   : > { %560 = vst.msk [vmem:[#allocation3 + $0x8] sm:$0xff] %vm558_vm0, %v557_v1 }
 0x418   : > { %v577_v5 = vld [vmem:[#allocation2] sm:$0xff]  ;;  %v578_v8 = vld [vmem:[#allocation2 + $0x8] sm:$0xff] }
 0x419   : > { %v587_v9 = vld [vmem:[#allocation4] sm:$0xff]  ;;  %v588_v12 = vld [vmem:[#allocation4 + $0x8] sm:$0xff] }
 0x41a   : > { %v579_v2 = vld [vmem:[#allocation3] sm:$0xff] }
 0x41b   : > { %886 = vlog2.f32 %v579_v2 }
 0x41e   : > { %v580_v3 = vld [vmem:[#allocation3 + $0x8] sm:$0xff] }
 0x41f   : > { %888 = vlog2.f32 %v580_v3 }
 0x428   : > { %v887_v4 = vpop.eup %886 }
 0x429   : > { %v582_v7 = vmul.f32 0.6931472, %v887_v4 }
 0x42b   : > { %v585_v11 = vadd.f32 %v582_v7, %v577_v5 }
 0x42c   : > { %v889_v6 = vpop.eup %888 }
 0x42d   : > { %v584_v10 = vmul.f32 0.6931472, %v889_v6  ;;  %v589_v14 = vsub.f32 %v585_v11, %v587_v9 }
 0x42f   : > { %v586_v13 = vadd.f32 %v584_v10, %v578_v8  ;;  %591 = vst.msk [vmem:[%s1247_s30] sm:$0xff] %vm558_vm0, %v589_v14 }
 0x431   : > { %v590_v15 = vsub.f32 %v586_v13, %v588_v12 }
 0x433   : > { %592 = vst.msk [vmem:[%s1247_s30 + $0x8] sm:$0xff] %vm558_vm0, %v590_v15 }
 0x434 PF: > { %s19_s22 = sadd.s32 1, %s1040_s22   ;;  %s1386_s11 = sld [smem:[#allocation11_spill]] }
 0x435   : > { %p16_p2 = scmp.ge.s32.totalorder %s19_s22, 8   ;;  %s1387_s12 = smov %s1004_s13 }
 0x436   : > { %s1388_s13 = smov %s1008_s14  ;;  %s1389_s14 = smov %s1197_s9 }
 0x437   : > { %s1390_s15 = smov %s1016_s16  ;;  %s1391_s16 = smov %s1020_s17 }
 0x438   : > { %s1392_s17 = smov %s1208_s6  ;;  %s1393_s18 = smov %s1032_s20 }
 0x439   : > { %s1394_s19 = smov %s1036_s21  ;;  %s1396_s21 = smov %s1402_s24 }
 0x43a   : > { %s1395_s20 = smov %s1386_s11  ;;  %18 = sbr.rel (!%p16_p2) target bundleno = 12 (0xc), region = 96 }
 0x43f   :  { %615 = vsyncpa [#allocation6], 1 }
 0x440   :  { %617 = vsyncpa [#allocation6 + $0x1], 1 }
 0x441   :  { %618 = vsyncpa [#allocation8], 1 }
 0x442   :  { %620 = vsyncpa [#allocation8 + $0x1], 1 }

</bundles_post_ra>
